<compile_context>
chip_gen: v5e
topology: v5e:2x2
jax: 0.10.0
libtpu: 0.0.40
codegen_flags: <defaults>
</compile_context>

<pallas_src>
import math

import jax
import jax.numpy as jnp
from jax.experimental import pallas as pl
from jax.experimental.pallas import tpu as pltpu

LANES = 128
SUBLANES = 8
TARGET_BLOCK_BYTES = 4 << 20   # ~4 MiB per input block per grid step.
VMEM_LIMIT_BYTES = 32 << 20    # Safe on v5e/v6e (128 MiB phys) and v7x (64 MiB phys).
MIN_PALLAS_ROWS = 4096         # Below this a plain XLA reduce beats the launch cost.


def _make_simse_sum_kernel(block_rows: int):
    """Kernel accumulating an (8, 128) partial sum of (target - pred)."""

    def kernel(pred_ref, target_ref, out_ref):
        step = pl.program_id(1)   # reduction axis; axis 0 is the parallel shard.

        # Output block index is constant along the reduction axis, so the
        # accumulator stays resident in VMEM: init once per shard, write back
        # once when the shard index changes / at the end.
        @pl.when(step == 0)
        def _():
            out_ref[...] = jnp.zeros_like(out_ref)

        diff = (target_ref[...].astype(jnp.float32)
                - pred_ref[...].astype(jnp.float32))

        # Fold (block_rows, 128) -> (8, 128) with element-wise vreg adds only:
        # 2 VALU ops per vreg in the hot loop, no mask, no cross-lane/sublane
        # XLU reduce.  The single full reduction + square + 1/N^2 happen once,
        # outside the loop.
        out_ref[...] += jnp.sum(
            diff.reshape(block_rows // SUBLANES, SUBLANES, LANES), axis=0)

    return kernel


def simse(pred: jax.Array, target: jax.Array, *,
          min_pallas_rows: int = MIN_PALLAS_ROWS,
          block_bytes: int = TARGET_BLOCK_BYTES) -> jax.Array:
    """SIMSE loss, matching the PyTorch module's forward exactly."""
    assert pred.shape == target.shape, (pred.shape, target.shape)
    n = pred.shape[0]                    # PyTorch: pred.size(0) — leading dim.
    inv_n2 = 1.0 / float(n) ** 2

    total = math.prod(pred.shape)
    p_flat = pred.reshape(-1)
    t_flat = target.reshape(-1)

    rows = total // LANES
    itemsize = jnp.dtype(pred.dtype).itemsize
    # Sub-32-bit dtypes pack along sublanes: keep row blocks aligned to packing.
    row_align = max(SUBLANES, (SUBLANES * 4) // max(itemsize, 1))

    if rows < max(min_pallas_rows, row_align):
        # Small-input fallback: fused XLA reduce, no pallas_call overhead.
        s = jnp.sum(t_flat.astype(jnp.float32) - p_flat.astype(jnp.float32))
        return (s * s) * inv_n2

    # ---- Block sizing by bytes (dtype-aware). ----
    target_rows = max(row_align,
                      (block_bytes // (LANES * itemsize)) // row_align * row_align)
    block_rows = min(target_rows, (rows // row_align) * row_align)
    chunks = rows // block_rows

    # Leading "parallel" shard axis (2-way when there is enough work): engages
    # both TensorCores on v7x; serial-and-free on single-TC chips.
    num_shards = 2 if chunks >= 2 else 1
    steps = chunks // num_shards
    rows_used = num_shards * steps * block_rows
    used = rows_used * LANES

    p_main = p_flat[:used].reshape(rows_used, LANES)
    t_main = t_flat[:used].reshape(rows_used, LANES)

    cost = pl.CostEstimate(
        flops=2 * used,
        transcendentals=0,
        bytes_accessed=2 * used * itemsize + num_shards * SUBLANES * LANES * 4,
    )

    def in_map(shard, step):
        return (shard * steps + step, 0)

    acc = pl.pallas_call(
        _make_simse_sum_kernel(block_rows),
        out_shape=jax.ShapeDtypeStruct((num_shards * SUBLANES, LANES), jnp.float32),
        grid_spec=pltpu.PrefetchScalarGridSpec(
            num_scalar_prefetch=0,
            grid=(num_shards, steps),
            in_specs=[
                pl.BlockSpec((block_rows, LANES), in_map),
                pl.BlockSpec((block_rows, LANES), in_map),
            ],
            out_specs=pl.BlockSpec((SUBLANES, LANES), lambda shard, step: (shard, 0)),
        ),
        compiler_params=pltpu.CompilerParams(
            dimension_semantics=("parallel", "arbitrary"),
            vmem_limit_bytes=VMEM_LIMIT_BYTES,
        ),
        cost_estimate=cost,
    )(p_main, t_main)

    s = jnp.sum(acc)
    if used < total:
        # Ragged trailing rows + <128-lane remainder: tiny XLA reduce keeps the
        # Pallas hot loop mask-free and never touches block padding.
        s = s + jnp.sum(t_flat[used:].astype(jnp.float32)
                        - p_flat[used:].astype(jnp.float32))

    return (s * s) * inv_n2


def simse_ref(pred, target):
    # Pure-JAX reference for correctness checking.
    return jnp.sum(target - pred) ** 2 / pred.shape[0] ** 2


if __name__ == "__main__":
    key = jax.random.PRNGKey(0)
    k1, k2, k3, k4 = jax.random.split(key, 4)

    # 1) Small NCHW feature map (consistent with a conv-style loss input),
    #    forced through the Pallas path (the default wrapper would route a
    #    tensor this small to the XLA fallback).
    pred = jax.random.normal(k1, (2, 4, 16, 16), dtype=jnp.float32)
    target = jax.random.normal(k2, (2, 4, 16, 16), dtype=jnp.float32)
    out = jax.block_until_ready(simse(pred, target, min_pallas_rows=0))
    ref = jax.block_until_ready(simse_ref(pred, target))
    assert jnp.allclose(out, ref, rtol=1e-5, atol=1e-5), (out, ref)

    # Default wrapper (small-input XLA fallback) must agree too.
    out_fb = jax.block_until_ready(simse(pred, target))
    assert jnp.allclose(out_fb, ref, rtol=1e-5, atol=1e-5), (out_fb, ref)

    # 2) Modest input with a tiny block size to exercise the 2-shard parallel
    #    axis, the multi-step resident accumulator and the ragged-tail path.
    pred2 = jax.random.normal(k3, (2, 4, 40, 128), dtype=jnp.float32)
    target2 = jax.random.normal(k4, (2, 4, 40, 128), dtype=jnp.float32)
    out2 = jax.block_until_ready(
        simse(pred2, target2, min_pallas_rows=0, block_bytes=64 * LANES * 4))
    ref2 = jax.block_until_ready(simse_ref(pred2, target2))
    assert jnp.allclose(out2, ref2, rtol=1e-4, atol=1e-4), (out2, ref2)

    print("KERNEL_OK")
</pallas_src>

<mosaic_0001>
module attributes {stable_mosaic.version = 11 : i64} {
  func.func @kernel(%arg0: i32, %arg1: i32, %arg2: memref<16x128xf32, #tpu.memory_space<vmem>>, %arg3: memref<16x128xf32, #tpu.memory_space<vmem>>, %arg4: memref<8x128xf32, #tpu.memory_space<vmem>>) attributes {dimension_semantics = [#tpu.dimension_semantics<parallel>, #tpu.dimension_semantics<arbitrary>], iteration_bounds = array<i64: 1, 1>, scalar_prefetch = 0 : i64, scratch_operands = 0 : i64, tpu.core_type = #tpu.core_type<tc>, window_params = [{transform_indices = @transform_0, window_bounds = array<i64: 16, 128>}, {transform_indices = @transform_1, window_bounds = array<i64: 16, 128>}, {transform_indices = @transform_2, window_bounds = array<i64: 8, 128>}]} {
    %c0_i32 = arith.constant 0 : i32
    %0 = arith.cmpi eq, %arg1, %c0_i32 : i32
    %1 = arith.extui %0 : i1 to i32
    %c0_i32_0 = arith.constant 0 : i32
    %2 = arith.cmpi ne, %1, %c0_i32_0 : i32
    scf.if %2 {
      %cst_8 = arith.constant 0.000000e+00 : f32
      %11 = vector.broadcast %cst_8 : f32 to vector<8x128xf32>
      %c0_9 = arith.constant 0 : index
      %c0_10 = arith.constant 0 : index
      %12 = vector.load %arg4[%c0_9, %c0_10] : memref<8x128xf32, #tpu.memory_space<vmem>>, vector<8x128xf32>
      tpu.vector_store %arg4[%c0_9, %c0_10], %11 {strides = array<i32>} : memref<8x128xf32, #tpu.memory_space<vmem>>, vector<8x128xf32>,
    } else {
    }
    %c0 = arith.constant 0 : index
    %c0_1 = arith.constant 0 : index
    %3 = vector.load %arg3[%c0, %c0_1] : memref<16x128xf32, #tpu.memory_space<vmem>>, vector<16x128xf32>
    %c0_2 = arith.constant 0 : index
    %c0_3 = arith.constant 0 : index
    %4 = vector.load %arg2[%c0_2, %c0_3] : memref<16x128xf32, #tpu.memory_space<vmem>>, vector<16x128xf32>
    %5 = arith.subf %3, %4 : vector<16x128xf32>
    %c0_4 = arith.constant 0 : index
    %c0_5 = arith.constant 0 : index
    %6 = vector.load %arg4[%c0_4, %c0_5] : memref<8x128xf32, #tpu.memory_space<vmem>>, vector<8x128xf32>
    %7 = vector.shape_cast %5 : vector<16x128xf32> to vector<2x8x128xf32>
    %cst = arith.constant dense<0.000000e+00> : vector<8x128xf32>
    %8 = vector.multi_reduction <add>, %7, %cst [0] : vector<2x8x128xf32> to vector<8x128xf32>
    %9 = arith.addf %6, %8 : vector<8x128xf32>
    %c0_6 = arith.constant 0 : index
    %c0_7 = arith.constant 0 : index
    %10 = vector.load %arg4[%c0_6, %c0_7] : memref<8x128xf32, #tpu.memory_space<vmem>>, vector<8x128xf32>
    tpu.vector_store %arg4[%c0_6, %c0_7], %9 {strides = array<i32>} : memref<8x128xf32, #tpu.memory_space<vmem>>, vector<8x128xf32>,
    return
  }
  func.func @transform_0(%arg0: i32, %arg1: i32) -> (i32, i32) {
    %c1_i32 = arith.constant 1 : i32
    %0 = arith.muli %arg0, %c1_i32 : i32
    %1 = arith.addi %0, %arg1 : i32
    %c0_i32 = arith.constant 0 : i32
    %c0_i32_0 = arith.constant 0 : i32
    return %1, %c0_i32 : i32, i32
  }
  func.func @transform_1(%arg0: i32, %arg1: i32) -> (i32, i32) {
    %c1_i32 = arith.constant 1 : i32
    %0 = arith.muli %arg0, %c1_i32 : i32
    %1 = arith.addi %0, %arg1 : i32
    %c0_i32 = arith.constant 0 : i32
    %c0_i32_0 = arith.constant 0 : i32
    return %1, %c0_i32 : i32, i32
  }
  func.func @transform_2(%arg0: i32, %arg1: i32) -> (i32, i32) {
    %c0_i32 = arith.constant 0 : i32
    %c0_i32_0 = arith.constant 0 : i32
    return %arg0, %c0_i32 : i32, i32
  }
}

</mosaic_0001>

<bundles_post_ra>
// kernel: tpu_custom_call.1
= control target key start
LH: loop header
LB: loop body
LE: loop exit
PB: predicated region body
PF: predicated region fallthrough
CT: control target
= control target key end

     0   :  { %7 = vsyncpa [#allocation3], 0  ;;  %s202_s0 = inlined_call_operand.hbm [shape: f32[16,128], index: 0, kind: input, shape index: {}]   ;;  %s203_s1 = inlined_call_operand.hbm [shape: f32[16,128], index: 1, kind: input, shape index: {}]   ;;  %s204_s2 = inlined_call_operand.hbm [shape: f32[8,128], index: 2, kind: output, shape index: {}]  }
   0x1   :  { %8 = vsyncpa [#allocation6], 0 }
   0x2   :  { %9 = vsyncpa [#allocation4], 0  ;;  %s18_s11 = sshll.u32 %s202_s0, 4  ;;  %s173_s12 = smov [#allocation2]   ;;  %s19_s11 = int_to_ptr.hbm [resolvable:$true] %s18_s11 }
   0x3   :  { %s20_s13 = sshll.u32 %s173_s12, 4  ;;  %s35_s16 = sshll.u32 %s203_s1, 4  ;;  %s21_s13 = int_to_ptr.vmem [resolvable:$true] %s20_s13  ;;  %s36_s16 = int_to_ptr.hbm [resolvable:$true] %s35_s16 }
   0x4   :  { %s174_s17 = smov 128   ;;  %s175_s18 = smov 8  }
   0x5   :  { %26 = dma.hbm_to_vmem [thread:$0]  %s19_s11, 256, %s21_s13, [#allocation3], %s174_s17, %s174_s17, %s175_s18  }
   0x6   :  { %s176_s19 = smov [#allocation5]  }
   0x7   :  { %s37_s20 = sshll.u32 %s176_s19, 4  ;;  %s38_s20 = int_to_ptr.vmem [resolvable:$true] %s37_s20 }
   0x8   :  { %43 = dma.hbm_to_vmem [thread:$0]  %s36_s16, 256, %s38_s20, [#allocation6], %s174_s17, %s174_s17, %s175_s18  }
   0x9   :  { %167 = dma.done.wait [#allocation3], 256  }
   0xa   :  { %168 = vsyncadd [#allocation3], 4294967040 }
   0xb   :  { %169 = dma.done.wait [#allocation6], 256  }
   0xc   :  { %170 = vsyncadd [#allocation6], 4294967040  ;;  %v61_v0 = vld [vmem:[#allocation5] sm:$0xff]  ;;  %v62_v1 = vld [vmem:[#allocation5 + $0x8] sm:$0xff]  ;;  %s177_s0 = smov [#allocation7]   ;;  %s78_s23 = sshll.u32 %s204_s2, 4  ;;  %s79_s23 = int_to_ptr.hbm [resolvable:$true] %s78_s23 }
   0xd   :  { %v63_v2 = vld [vmem:[#allocation2] sm:$0xff]  ;;  %v64_v3 = vld [vmem:[#allocation2 + $0x8] sm:$0xff]  ;;  %s76_s1 = sshll.u32 %s177_s0, 4  ;;  %s77_s1 = int_to_ptr.vmem [resolvable:$true] %s76_s1 }
   0xe   :  { %v65_v4 = vsub.f32 %v61_v0, %v63_v2  ;;  %v66_v5 = vsub.f32 %v62_v1, %v64_v3 }
  0x10   :  { %v68_v6 = vadd.f32 %v66_v5, %v65_v4 }
  0x12   :  { %70 = vst [vmem:[#allocation7] sm:$0xff] %v68_v6 }
  0x13   :  { %81 = dma.vmem_to_hbm [thread:$0]  %s77_s1, 128, %s79_s23, [#allocation4]  }
  0x14   :  { %171 = dma.done.wait [#allocation4], 128  }
  0x15   :  { %172 = vsyncadd [#allocation4], 4294967168 }
  0x16   :  { %86 = vsyncpa [#allocation3], 1 }
  0x17   :  { %87 = vsyncpa [#allocation6], 1 }
  0x18   :  { %88 = vsyncpa [#allocation4], 1 }

</bundles_post_ra>
